<compile_context>
chip_gen: v7x
topology: tpu7x:2x2x1
jax: 0.10.0
libtpu: 0.0.40
codegen_flags: <defaults>
</compile_context>

<pallas_src>
import math
import functools

import jax
import jax.numpy as jnp
from jax.experimental import pallas as pl
from jax.experimental.pallas import tpu as pltpu


# ------------------------------ helpers ------------------------------------

def _round_up(n, m):
    return ((n + m - 1) // m) * m


def _pick_time_tile(s, target=16):
    """Largest divisor of s that is <= target."""
    for ts in range(min(s, target), 0, -1):
        if s % ts == 0:
            return ts
    return 1


def _pick_batch_tile(b):
    """Multiple-of-8 divisor of b, preferring >=2 chunks (v7x megacore)."""
    divs = [d for d in range(8, b + 1, 8) if b % d == 0]
    multi = [d for d in divs if b // d >= 2]
    return max(multi) if multi else b


def _sigmoid(x):
    # tanh-form sigmoid: a single EUP push instead of exp + reciprocal.
    return 0.5 * (1.0 + jnp.tanh(0.5 * x))


# ------------------------------ kernels ------------------------------------

def matmul_bias_kernel(x_ref, w_ref, b_ref, o_ref):
    """out = x @ w + b ; bf16 MXU operands, f32 accumulate."""
    acc = jax.lax.dot_general(
        x_ref[...], w_ref[...],
        (((1,), (0,)), ((), ())),
        preferred_element_type=jnp.float32)
    o_ref[...] = (acc + b_ref[...]).astype(o_ref.dtype)


def lstm_recurrence_kernel(xw_ref, whh_ref, h0_ref, c0_ref,
                           y_ref, hn_ref, cn_ref, h_sc, c_sc):
    """One (batch-chunk, time-chunk) grid step of the LSTM recurrence.

    xw_ref : (TS, TB, 4H) bf16 -- precomputed x_t @ W_ih^T + (b_ih + b_hh)
    whh_ref: (H, 4H)      bf16 -- recurrent weight, VMEM-resident (constant map)
    h0/c0  : (TB, H)      f32
    y_ref  : (TS, TB, H)  bf16
    hn/cn  : (TB, H)      f32  -- written only on the last time chunk
    h_sc/c_sc : VMEM scratch carrying state across time chunks.
    """
    t_idx = pl.program_id(1)

    @pl.when(t_idx == 0)
    def _():
        h_sc[...] = h0_ref[...]
        c_sc[...] = c0_ref[...]

    TS = xw_ref.shape[0]
    H = whh_ref.shape[0]

    def step(t, carry):
        h, c = carry
        gates = xw_ref[t].astype(jnp.float32) + jax.lax.dot_general(
            h.astype(jnp.bfloat16), whh_ref[...],
            (((1,), (0,)), ((), ())),
            preferred_element_type=jnp.float32)          # (TB, 4H) f32
        # PyTorch LSTM gate order: input, forget, cell(g), output.
        i = _sigmoid(gates[:, 0 * H:1 * H])
        f = _sigmoid(gates[:, 1 * H:2 * H])
        g = jnp.tanh(gates[:, 2 * H:3 * H])
        o = _sigmoid(gates[:, 3 * H:4 * H])
        c = f * c + i * g
        h = o * jnp.tanh(c)
        y_ref[t] = h.astype(y_ref.dtype)
        return (h, c)

    h_fin, c_fin = jax.lax.fori_loop(
        0, TS, step, (h_sc[...], c_sc[...]), unroll=min(TS, 8))
    h_sc[...] = h_fin
    c_sc[...] = c_fin

    @pl.when(t_idx == pl.num_programs(1) - 1)
    def _():
        hn_ref[...] = h_fin
        cn_ref[...] = c_fin


# ------------------------------ wrappers -----------------------------------

def matmul_bias(x, w_t, b2d, *, out_dtype=jnp.bfloat16, row_tile=256,
                stream_weight_once=False):
    """(rows, K) @ (K, cols) + (1, cols); K mult of 128, cols mult of 512.

    Rows are zero-padded to the row tile and sliced back; tiles are capped so
    no block ever falls back to a full (huge) extent.
    """
    rows, K = x.shape
    Kw, cols = w_t.shape
    assert K == Kw and K % 128 == 0 and cols % 512 == 0, (K, cols)

    tn = 512
    if stream_weight_once:
        # One (capped) row tile so W streams from HBM exactly once.
        tm = min(_round_up(rows, 8), 2048)
    else:
        tm = min(row_tile, _round_up(rows, 8))
    rows_p = _round_up(rows, tm)
    if rows_p != rows:
        x = jnp.pad(x, ((0, rows_p - rows), (0, 0)))

    grid = (rows_p // tm, cols // tn)

    x_b = tm * K * x.dtype.itemsize
    w_b = K * tn * w_t.dtype.itemsize
    b_b = tn * 4
    o_b = tm * tn * jnp.dtype(out_dtype).itemsize
    vmem_limit = int(min(2 * (x_b + w_b + b_b + o_b) + (4 << 20), 64 << 20))
    cost = pl.CostEstimate(
        flops=2 * rows_p * cols * K,
        transcendentals=0,
        bytes_accessed=rows_p * K * x.dtype.itemsize
        + (rows_p // tm) * K * cols * w_t.dtype.itemsize
        + rows_p * cols * jnp.dtype(out_dtype).itemsize)

    out = pl.pallas_call(
        matmul_bias_kernel,
        out_shape=jax.ShapeDtypeStruct((rows_p, cols), out_dtype),
        grid=grid,
        in_specs=[pl.BlockSpec((tm, K), lambda i, j: (i, 0)),
                  pl.BlockSpec((K, tn), lambda i, j: (0, j)),
                  pl.BlockSpec((1, tn), lambda i, j: (0, j))],
        out_specs=pl.BlockSpec((tm, tn), lambda i, j: (i, j)),
        compiler_params=pltpu.CompilerParams(
            dimension_semantics=("parallel", "parallel"),
            vmem_limit_bytes=vmem_limit),
        cost_estimate=cost,
    )(x, w_t, b2d)
    return out[:rows] if rows_p != rows else out


def lstm_recurrence(xw3, whh_t, h0, c0):
    """xw3: (S, B, 4H) bf16, whh_t: (H, 4H) bf16, h0/c0: (B, H) f32."""
    S, B, four_h = xw3.shape
    H = whh_t.shape[0]
    assert four_h == 4 * H and H % 128 == 0 and B % 8 == 0

    TS = _pick_time_tile(S)
    TB = _pick_batch_tile(B)
    nb, nt = B // TB, S // TS

    xw_b = TS * TB * four_h * 2
    y_b = TS * TB * H * 2
    whh_b = H * four_h * 2
    st_b = TB * H * 4
    vmem_limit = int(min(2 * (xw_b + y_b) + 2 * whh_b + 8 * st_b + (4 << 20),
                         64 << 20))
    cost = pl.CostEstimate(
        flops=2 * S * B * H * four_h + 12 * S * B * H,
        transcendentals=5 * S * B * H,
        bytes_accessed=S * B * four_h * 2 + S * B * H * 2 + whh_b
        + 4 * B * H * 4)

    return pl.pallas_call(
        lstm_recurrence_kernel,
        out_shape=(jax.ShapeDtypeStruct((S, B, H), jnp.bfloat16),
                   jax.ShapeDtypeStruct((B, H), jnp.float32),
                   jax.ShapeDtypeStruct((B, H), jnp.float32)),
        grid=(nb, nt),
        in_specs=[
            pl.BlockSpec((TS, TB, four_h), lambda b, t: (t, b, 0)),
            pl.BlockSpec((H, four_h), lambda b, t: (0, 0)),   # VMEM-resident
            pl.BlockSpec((TB, H), lambda b, t: (b, 0)),
            pl.BlockSpec((TB, H), lambda b, t: (b, 0)),
        ],
        out_specs=(
            pl.BlockSpec((TS, TB, H), lambda b, t: (t, b, 0)),
            pl.BlockSpec((TB, H), lambda b, t: (b, 0)),
            pl.BlockSpec((TB, H), lambda b, t: (b, 0)),
        ),
        scratch_shapes=[pltpu.VMEM((TB, H), jnp.float32),
                        pltpu.VMEM((TB, H), jnp.float32)],
        compiler_params=pltpu.CompilerParams(
            dimension_semantics=("parallel", "arbitrary"),
            vmem_limit_bytes=vmem_limit),
        cost_estimate=cost,
    )(xw3, whh_t, h0, c0)


# ------------------------- parameters / forward -----------------------------

def init_params(key, ntoken, ninp, nhid, nlayers):
    """Synthetic init matching RNNModel.__init__ / init_weights ('LSTM')."""
    initrange = 0.1
    keys = jax.random.split(key, 2 + 4 * nlayers)

    def u(k, shape, s):
        return jax.random.uniform(k, shape, jnp.float32, minval=-s, maxval=s)

    params = {
        "emb": u(keys[0], (ntoken, ninp), initrange),      # nn.Embedding weight
        "dec_w": u(keys[1], (ntoken, nhid), initrange),    # decoder Linear weight
        "dec_b": jnp.zeros((ntoken,), jnp.float32),        # decoder bias zeroed
        "layers": [],
    }
    ki = 2
    s = 1.0 / math.sqrt(nhid)                              # PyTorch LSTM default init
    for l in range(nlayers):
        din = ninp if l == 0 else nhid
        params["layers"].append({
            "w_ih": u(keys[ki + 0], (4 * nhid, din), s),
            "w_hh": u(keys[ki + 1], (4 * nhid, nhid), s),
            "b_ih": u(keys[ki + 2], (4 * nhid,), s),
            "b_hh": u(keys[ki + 3], (4 * nhid,), s),
        })
        ki += 4
    return params


def _pad_gates_rows(w, nhid, h_pad):
    """(4*nhid, din) -> (4*h_pad, din): zero-pad each gate block independently
    so gate k lands at rows [k*h_pad, (k+1)*h_pad) (lane-aligned slices)."""
    parts = [jnp.pad(w[k * nhid:(k + 1) * nhid], ((0, h_pad - nhid), (0, 0)))
             for k in range(4)]
    return jnp.concatenate(parts, axis=0)


def prepare_kernel_params(params):
    """One-time weight prep: pad dims to TPU-friendly multiples, transpose to
    (in, out), cast MXU operands to bf16, fuse the two LSTM biases."""
    ntoken, ninp = params["emb"].shape
    nhid = params["dec_w"].shape[1]
    h_pad = _round_up(nhid, 128)
    ninp_pad = _round_up(ninp, 128)
    ntok_pad = _round_up(ntoken, 512)

    prep = {
        "dims": dict(ntoken=ntoken, ninp=ninp, nhid=nhid,
                     H_pad=h_pad, ninp_pad=ninp_pad, ntok_pad=ntok_pad),
        # embedding table: pad feature dim, bf16 (halves gather bandwidth)
        "emb": jnp.pad(params["emb"],
                       ((0, 0), (0, ninp_pad - ninp))).astype(jnp.bfloat16),
        "dec_w_t": jnp.pad(params["dec_w"],
                           ((0, ntok_pad - ntoken), (0, h_pad - nhid))
                           ).T.astype(jnp.bfloat16),          # (H_pad, ntok_pad)
        "dec_b": jnp.pad(params["dec_b"],
                         (0, ntok_pad - ntoken))[None, :],     # (1, ntok_pad) f32
        "layers": [],
    }
    for l, lp in enumerate(params["layers"]):
        din_pad = ninp_pad if l == 0 else h_pad
        w_ih = _pad_gates_rows(lp["w_ih"], nhid, h_pad)        # (4H_pad, din)
        w_ih = jnp.pad(w_ih, ((0, 0), (0, din_pad - w_ih.shape[1])))
        w_hh = _pad_gates_rows(lp["w_hh"], nhid, h_pad)        # (4H_pad, nhid)
        w_hh = jnp.pad(w_hh, ((0, 0), (0, h_pad - nhid)))
        b = _pad_gates_rows((lp["b_ih"] + lp["b_hh"])[:, None], nhid, h_pad)[:, 0]
        prep["layers"].append({
            "wih_t": w_ih.T.astype(jnp.bfloat16),              # (din_pad, 4H_pad)
            "whh_t": w_hh.T.astype(jnp.bfloat16),              # (H_pad, 4H_pad)
            "b": b[None, :],                                   # (1, 4H_pad) f32
        })
    return prep


def init_hidden(nlayers, bsz, nhid):
    return (jnp.zeros((nlayers, bsz, nhid), jnp.float32),
            jnp.zeros((nlayers, bsz, nhid), jnp.float32))


def rnn_forward(src, hidden, kp):
    """RNNModel.forward for rnn_type='LSTM' (eval mode)."""
    S, B = src.shape
    d = kp["dims"]
    H_pad = d["H_pad"]
    B_pad = _round_up(B, 8)

    h0_all, c0_all = hidden                                  # (nlayers, B, nhid)
    pad_bh = ((0, 0), (0, B_pad - B), (0, H_pad - d["nhid"]))
    h0_all = jnp.pad(h0_all, pad_bh)
    c0_all = jnp.pad(c0_all, pad_bh)

    # Embedding gather (plain-JAX glue).  Dropout (p=0.5) is identity in eval.
    # TODO(synk): dropout omitted (deterministic eval-mode forward).
    emb = kp["emb"][src]                                     # (S, B, ninp_pad) bf16
    emb = jnp.pad(emb, ((0, 0), (0, B_pad - B), (0, 0)))     # zero-pad batch rows
    x = emb.reshape(S * B_pad, -1)                           # seq-major bf16 rows

    hns, cns = [], []
    for l, lp in enumerate(kp["layers"]):
        # One big MXU matmul for the input projection of ALL timesteps.
        xw = matmul_bias(x, lp["wih_t"], lp["b"], out_dtype=jnp.bfloat16)
        xw3 = xw.reshape(S, B_pad, -1)
        y, hn, cn = lstm_recurrence(xw3, lp["whh_t"], h0_all[l], c0_all[l])
        x = y.reshape(S * B_pad, H_pad)                      # bf16
        hns.append(hn)
        cns.append(cn)

    # Decoder Linear: weight streamed from HBM exactly once, logits f32.
    logits = matmul_bias(x, kp["dec_w_t"], kp["dec_b"],
                         out_dtype=jnp.float32, stream_weight_once=True)
    decoded = logits.reshape(S, B_pad, -1)[:, :B, :d["ntoken"]]   # (S, B, ntoken)
    hn = jnp.stack(hns, 0)[:, :B, :d["nhid"]]
    cn = jnp.stack(cns, 0)[:, :B, :d["nhid"]]
    return decoded, (hn, cn)

# TODO(synk): only rnn_type='LSTM' implemented; GRU / RNN_TANH / RNN_RELU would
# reuse the same (batched input-projection + recurrence-kernel) pattern.
# TODO(synk): optional fp8 decoder weight (v7x) / int8 (v5e/v6e) not implemented.


if __name__ == "__main__":
    ntoken, ninp, nhid, nlayers = 50, 32, 64, 2
    S, B = 8, 2

    key = jax.random.PRNGKey(0)
    kparam, ktok = jax.random.split(key)
    params = init_params(kparam, ntoken, ninp, nhid, nlayers)
    kparams = prepare_kernel_params(params)            # one-time weight prep
    src = jax.random.randint(ktok, (S, B), 0, ntoken, dtype=jnp.int32)
    hidden = init_hidden(nlayers, B, nhid)

    decoded, (hn, cn) = rnn_forward(src, hidden, kparams)
    decoded = jax.block_until_ready(decoded)
    hn = jax.block_until_ready(hn)
    cn = jax.block_until_ready(cn)

    assert decoded.shape == (S, B, ntoken), decoded.shape
    assert hn.shape == (nlayers, B, nhid) and cn.shape == (nlayers, B, nhid)
    assert bool(jnp.all(jnp.isfinite(decoded))), "non-finite logits"
    assert bool(jnp.all(jnp.isfinite(hn))) and bool(jnp.all(jnp.isfinite(cn)))
    print("KERNEL_OK")
</pallas_src>

<mosaic_0001>
module attributes {stable_mosaic.version = 11 : i64} {
  func.func @matmul_bias_kernel(%arg0: i32, %arg1: i32, %arg2: memref<64x128xbf16, #tpu.memory_space<vmem>>, %arg3: memref<128x512xbf16, #tpu.memory_space<vmem>>, %arg4: memref<1x512xf32, #tpu.memory_space<vmem>>, %arg5: memref<64x512xbf16, #tpu.memory_space<vmem>>) attributes {dimension_semantics = [#tpu.dimension_semantics<parallel>, #tpu.dimension_semantics<parallel>], iteration_bounds = array<i64: 1, 1>, scalar_prefetch = 0 : i64, scratch_operands = 0 : i64, tpu.core_type = #tpu.core_type<tc>, window_params = [{transform_indices = @transform_0, window_bounds = array<i64: 64, 128>}, {transform_indices = @transform_1, window_bounds = array<i64: 128, 512>}, {transform_indices = @transform_2, window_bounds = array<i64: 1, 512>}, {transform_indices = @transform_3, window_bounds = array<i64: 64, 512>}]} {
    %c0 = arith.constant 0 : index
    %c0_0 = arith.constant 0 : index
    %0 = vector.load %arg2[%c0, %c0_0] : memref<64x128xbf16, #tpu.memory_space<vmem>>, vector<64x128xbf16>
    %c0_1 = arith.constant 0 : index
    %c0_2 = arith.constant 0 : index
    %1 = vector.load %arg3[%c0_1, %c0_2] : memref<128x512xbf16, #tpu.memory_space<vmem>>, vector<128x512xbf16>
    %cst = arith.constant dense<0.000000e+00> : vector<64x512xf32>
    %2 = tpu.matmul %0, %1, %cst {dimension_numbers = #tpu.dot_dimension_numbers<[1], [0], [0], [1], [0, 0, 1, 1], [], []>} : vector<64x128xbf16>, vector<128x512xbf16>, vector<64x512xf32> -> vector<64x512xf32>
    %c0_3 = arith.constant 0 : index
    %c0_4 = arith.constant 0 : index
    %3 = vector.load %arg4[%c0_3, %c0_4] : memref<1x512xf32, #tpu.memory_space<vmem>>, vector<1x512xf32>
    %4 = vector.broadcast %3 : vector<1x512xf32> to vector<64x512xf32>
    %5 = arith.addf %2, %4 : vector<64x512xf32>
    %6 = arith.truncf %5 : vector<64x512xf32> to vector<64x512xbf16>
    %c0_5 = arith.constant 0 : index
    %c0_6 = arith.constant 0 : index
    %7 = vector.load %arg5[%c0_5, %c0_6] : memref<64x512xbf16, #tpu.memory_space<vmem>>, vector<64x512xbf16>
    tpu.vector_store %arg5[%c0_5, %c0_6], %6 {strides = array<i32>} : memref<64x512xbf16, #tpu.memory_space<vmem>>, vector<64x512xbf16>,
    return
  }
  func.func @transform_0(%arg0: i32, %arg1: i32) -> (i32, i32) {
    %c0_i32 = arith.constant 0 : i32
    %c0_i32_0 = arith.constant 0 : i32
    return %arg0, %c0_i32 : i32, i32
  }
  func.func @transform_1(%arg0: i32, %arg1: i32) -> (i32, i32) {
    %c0_i32 = arith.constant 0 : i32
    %c0_i32_0 = arith.constant 0 : i32
    return %c0_i32, %arg1 : i32, i32
  }
  func.func @transform_2(%arg0: i32, %arg1: i32) -> (i32, i32) {
    %c0_i32 = arith.constant 0 : i32
    %c0_i32_0 = arith.constant 0 : i32
    return %c0_i32, %arg1 : i32, i32
  }
  func.func @transform_3(%arg0: i32, %arg1: i32) -> (i32, i32) {
    %c0_i32 = arith.constant 0 : i32
    return %arg0, %arg1 : i32, i32
  }
}

</mosaic_0001>

<bundles_post_ra>
// kernel: tpu_custom_call.1
= control target key start
LH: loop header
LB: loop body
LE: loop exit
PB: predicated region body
PF: predicated region fallthrough
CT: control target
= control target key end

     0   :  { %8 = vsyncpa [#allocation3], 0  ;;  %s887_s0 = inlined_call_operand.hbm [shape: bf16[64,128], index: 0, kind: input, shape index: {}]   ;;  %s888_s1 = inlined_call_operand.hbm [shape: bf16[128,512], index: 1, kind: input, shape index: {}]   ;;  %s889_s2 = inlined_call_operand.vmem [shape: f32[1,512], index: 2, kind: input, shape index: {}]   ;;  %s890_s3 = inlined_call_operand.hbm [shape: bf16[64,512], index: 3, kind: output, shape index: {}]  }
   0x1   :  { %9 = vsyncpa [#allocation6], 0 }
   0x2   :  { %10 = vsyncpa [#allocation4], 0  ;;  %s766_s12 = smov [#allocation2]   ;;  %s694_s16 = scalar_lea.hbm %s887_s0, 512 }
   0x3   :  { %s16_s13 = sshll.u32 %s766_s12, 4  ;;  %p695_p0 = scmp.ne.s32.totalorder %s887_s0, %s694_s16  ;;  %s17_s13 = int_to_ptr.vmem [resolvable:$true] %s16_s13 }
   0x4   :  { %p698_p1 = scmp.lt.u32.totalorder %s694_s16, %s887_s0 }
   0x6   :  { %p700_p2 = pnand %p698_p1, %p695_p0 }
   0x8   :  { %703 = shalt.err (!%p700_p2)
}
   0x9   :  { %s704_s21 = scalar_lea.vmem %s17_s13, 512  ;;  %p709_p4 = scmp.lt.s32.totalorder %s17_s13, %s17_s13 }
   0xa   :  { %p705_p3 = scmp.ne.s32.totalorder %s17_s13, %s704_s21  ;;  %p710_p5 = scmp.lt.s32.totalorder %s704_s21, %s704_s21 }
   0xc   :  { %p711_p6 = por %p710_p5, %p709_p4 }
   0xe   :  { %p712_p7 = pnand %p711_p6, %p705_p3 }
  0x10   :  { %715 = shalt.err (!%p712_p7)
}
  0x11   :  { %s767_s22 = smov 64   ;;  %s768_s23 = smov 4  }
  0x12   :  { %22 = dma.hbm_to_vmem [thread:$0]  %s887_s0, 512, %s17_s13, [#allocation3], %s767_s22, %s767_s22, %s768_s23  }
  0x13   :  { %s769_s26 = smov [#allocation5]   ;;  %s716_s30 = scalar_lea.hbm %s888_s1, 4096 }
  0x14   :  { %s28_s27 = sshll.u32 %s769_s26, 4  ;;  %p717_p8 = scmp.ne.s32.totalorder %s888_s1, %s716_s30  ;;  %s29_s27 = int_to_ptr.vmem [resolvable:$true] %s28_s27 }
  0x15   :  { %p720_p9 = scmp.lt.u32.totalorder %s716_s30, %s888_s1 }
  0x17   :  { %p722_p10 = pnand %p720_p9, %p717_p8 }
  0x19   :  { %725 = shalt.err (!%p722_p10)
}
  0x1a   :  { %s726_s8 = scalar_lea.vmem %s29_s27, 4096  ;;  %p731_p12 = scmp.lt.s32.totalorder %s29_s27, %s29_s27 }
  0x1b   :  { %p727_p11 = scmp.ne.s32.totalorder %s29_s27, %s726_s8  ;;  %p732_p13 = scmp.lt.s32.totalorder %s726_s8, %s726_s8 }
  0x1d   :  { %p733_p0 = por %p732_p13, %p731_p12 }
  0x1f   :  { %p734_p1 = pnand %p733_p0, %p727_p11 }
  0x21   :  { %737 = shalt.err (!%p734_p1)
}
  0x22   :  { %s770_s0 = smov 256   ;;  %s771_s9 = smov 16  }
  0x23   :  { %34 = dma.hbm_to_vmem [thread:$0]  %s888_s1, 4096, %s29_s27, [#allocation6], %s770_s0, %s770_s0, %s771_s9  }
  0x24   :  { %760 = dma.done.wait [#allocation3], 512  }
  0x25   :  { %761 = vsyncadd [#allocation3], 4294966784 }
  0x26   :  { %762 = dma.done.wait [#allocation6], 4096  }
  0x27   :  { %763 = vsyncadd [#allocation6], 4294963200  ;;  %v772_v0 = vmov 0   ;;  %v642_v1 = vld [vmem:[#allocation5 + $0x4] ss:$16 sps:$4 sm:$0xff]   ;;  %v691_v34 = vld [vmem:[#allocation2 + $0x8] sm:$0xff]   ;;  %v86_v37 = vlaneseq }
  0x28   :  { %322 = vmatprep.mubr.bf16.mxu0 %v772_v0  ;;  %395 = vmatprep.mubr.bf16.mxu1 %v772_v0  ;;  %v644_v2 = vld [vmem:[#allocation5 + $0xc] ss:$16 sps:$4 sm:$0xff]   ;;  %v646_v3 = vld [vmem:[#allocation5] ss:$16 sps:$4 sm:$0xff]   ;;  %v647_v4 = vld [vmem:[#allocation5 + $0x8] ss:$16 sps:$4 sm:$0xff]  }
  0x29   :  { %290 = vmatprep.subr.bf16.mxu0 %v642_v1  ;;  %363 = vmatprep.subr.bf16.mxu1 %v644_v2  ;;  %v648_v5 = vld [vmem:[#allocation5 + $0x24] ss:$16 sps:$4 sm:$0xff]   ;;  %v650_v6 = vld [vmem:[#allocation5 + $0x2c] ss:$16 sps:$4 sm:$0xff]   ;;  %v652_v7 = vld [vmem:[#allocation5 + $0x20] ss:$16 sps:$4 sm:$0xff]  }
  0x2a   :  { %291 = vmatpush1.bf16.msra.mxu0 %v646_v3  ;;  %364 = vmatpush1.bf16.msra.mxu1 %v647_v4  ;;  %v653_v8 = vld [vmem:[#allocation5 + $0x28] ss:$16 sps:$4 sm:$0xff]   ;;  %v654_v9 = vld [vmem:[#allocation5 + $0x44] ss:$16 sps:$4 sm:$0xff]   ;;  %v656_v10 = vld [vmem:[#allocation5 + $0x4c] ss:$16 sps:$4 sm:$0xff]  }
  0x2b   :  { %292 = vmatprep.subr.bf16.mxu0 %v648_v5  ;;  %365 = vmatprep.subr.bf16.mxu1 %v650_v6  ;;  %v658_v11 = vld [vmem:[#allocation5 + $0x40] ss:$16 sps:$4 sm:$0xff]   ;;  %v659_v12 = vld [vmem:[#allocation5 + $0x48] ss:$16 sps:$4 sm:$0xff]   ;;  %v660_v13 = vld [vmem:[#allocation5 + $0x64] ss:$16 sps:$4 sm:$0xff]  }
  0x2c   :  { %v662_v14 = vld [vmem:[#allocation5 + $0x6c] ss:$16 sps:$4 sm:$0xff]   ;;  %v664_v15 = vld [vmem:[#allocation5 + $0x60] ss:$16 sps:$4 sm:$0xff]   ;;  %v665_v16 = vld [vmem:[#allocation5 + $0x68] ss:$16 sps:$4 sm:$0xff]  }
  0x2d   :  { %v666_v17 = vld [vmem:[#allocation5 + $0x84] ss:$16 sps:$4 sm:$0xff]   ;;  %v668_v18 = vld [vmem:[#allocation5 + $0x8c] ss:$16 sps:$4 sm:$0xff]   ;;  %v670_v19 = vld [vmem:[#allocation5 + $0x80] ss:$16 sps:$4 sm:$0xff]  }
  0x2e   :  { %293 = vmatpush1.bf16.msra.mxu0 %v652_v7  ;;  %366 = vmatpush1.bf16.msra.mxu1 %v653_v8  ;;  %v671_v20 = vld [vmem:[#allocation5 + $0x88] ss:$16 sps:$4 sm:$0xff]   ;;  %v672_v21 = vld [vmem:[#allocation5 + $0xa4] ss:$16 sps:$4 sm:$0xff]   ;;  %v674_v22 = vld [vmem:[#allocation5 + $0xac] ss:$16 sps:$4 sm:$0xff]  }
  0x2f   :  { %294 = vmatprep.subr.bf16.mxu0 %v654_v9  ;;  %367 = vmatprep.subr.bf16.mxu1 %v656_v10  ;;  %v676_v23 = vld [vmem:[#allocation5 + $0xa0] ss:$16 sps:$4 sm:$0xff]   ;;  %v677_v24 = vld [vmem:[#allocation5 + $0xa8] ss:$16 sps:$4 sm:$0xff]   ;;  %v678_v25 = vld [vmem:[#allocation5 + $0xc4] ss:$16 sps:$4 sm:$0xff]  }
  0x30   :  { %v680_v26 = vld [vmem:[#allocation5 + $0xcc] ss:$16 sps:$4 sm:$0xff]   ;;  %v682_v27 = vld [vmem:[#allocation5 + $0xc0] ss:$16 sps:$4 sm:$0xff]   ;;  %v683_v28 = vld [vmem:[#allocation5 + $0xc8] ss:$16 sps:$4 sm:$0xff]  }
  0x31   :  { %v684_v29 = vld [vmem:[#allocation5 + $0xe4] ss:$16 sps:$4 sm:$0xff]   ;;  %v686_v30 = vld [vmem:[#allocation5 + $0xec] ss:$16 sps:$4 sm:$0xff]   ;;  %v688_v31 = vld [vmem:[#allocation5 + $0xe0] ss:$16 sps:$4 sm:$0xff]  }
  0x32   :  { %295 = vmatpush1.bf16.msra.mxu0 %v658_v11  ;;  %368 = vmatpush1.bf16.msra.mxu1 %v659_v12  ;;  %v689_v32 = vld [vmem:[#allocation5 + $0xe8] ss:$16 sps:$4 sm:$0xff]   ;;  %v690_v33 = vld [vmem:[#allocation2] sm:$0xff]   ;;  %v692_v35 = vld [vmem:[#allocation2 + $0x10] sm:$0xff]   ;;  %v87_v38 = vshrl.u32 %v86_v37, 7 }
  0x33   :  { %296 = vmatprep.subr.bf16.mxu0 %v660_v13  ;;  %369 = vmatprep.subr.bf16.mxu1 %v662_v14  ;;  %v693_v36 = vld [vmem:[#allocation2 + $0x18] sm:$0xff]   ;;  %v84_v41 = vld [vmem:[%s889_s2] sm:$0xf]  ;;  %s773_s2 = smov [#allocation7]  }
  0x34   :  { %v88_v39 = vsub.s32 0, %v87_v38  ;;  %v96_v40 = vsub.s32 2, %v87_v38  ;;  %v92_v42 = vsub.s32 1, %v87_v38  ;;  %v100_v43 = vsub.s32 3, %v87_v38  ;;  %s553_s13 = sshll.u32 %s773_s2, 4  ;;  %s554_s13 = int_to_ptr.vmem [resolvable:$true] %s553_s13 }
  0x35   :  { %s738_s14 = scalar_lea.vmem %s554_s13, 2048  ;;  %p743_p3 = scmp.lt.s32.totalorder %s554_s13, %s554_s13 }
  0x36   :  { %297 = vmatpush1.bf16.msra.mxu0 %v664_v15  ;;  %370 = vmatpush1.bf16.msra.mxu1 %v665_v16  ;;  %v832_v44 = vrot.slane %v84_v41, %v88_v39  ;;  %v834_v45 = vrot.slane %v84_v41, %v96_v40  ;;  %v836_v46 = vrot.slane %v84_v41, %v92_v42  ;;  %p739_p2 = scmp.ne.s32.totalorder %s554_s13, %s738_s14  ;;  %p744_p4 = scmp.lt.s32.totalorder %s738_s14, %s738_s14 }
  0x37   :  { %298 = vmatprep.subr.bf16.mxu0 %v666_v17  ;;  %371 = vmatprep.subr.bf16.mxu1 %v668_v18  ;;  %v838_v47 = vrot.slane %v84_v41, %v100_v43 }
  0x38   :  { %p745_p5 = por %p744_p4, %p743_p3 }
  0x3a   :  { %299 = vmatpush1.bf16.msra.mxu0 %v670_v19  ;;  %372 = vmatpush1.bf16.msra.mxu1 %v671_v20  ;;  %p746_p6 = pnand %p745_p5, %p739_p2 }
  0x3b   :  { %300 = vmatprep.subr.bf16.mxu0 %v672_v21  ;;  %373 = vmatprep.subr.bf16.mxu1 %v674_v22 }
  0x3e   :  { %301 = vmatpush1.bf16.msra.mxu0 %v676_v23  ;;  %374 = vmatpush1.bf16.msra.mxu1 %v677_v24 }
  0x3f   :  { %302 = vmatprep.subr.bf16.mxu0 %v678_v25  ;;  %375 = vmatprep.subr.bf16.mxu1 %v680_v26 }
  0x42   :  { %303 = vmatpush1.bf16.msra.mxu0 %v682_v27  ;;  %376 = vmatpush1.bf16.msra.mxu1 %v683_v28 }
  0x43   :  { %304 = vmatprep.subr.bf16.mxu0 %v684_v29  ;;  %377 = vmatprep.subr.bf16.mxu1 %v686_v30 }
  0x46   :  { %305 = vmatpush1.bf16.msra.mxu0 %v688_v31  ;;  %378 = vmatpush1.bf16.msra.mxu1 %v689_v32 }
  0x49   :  { %323 = vmatmul.mubr.bf16.vlgmr.msra.gmra.mrb[0].mxu0 %v690_v33  ;;  %396 = vmatmul.mubr.bf16.vlgmr.msra.gmra.mrb[0].mxu1 %v690_v33 }
  0x4a   :  { %332 = vmatprep.mubr.bf16.mxu0 %v772_v0  ;;  %405 = vmatprep.mubr.bf16.mxu1 %v772_v0 }
  0x51   :  { %333 = vmatmul.mubr.bf16.gmra.mrb[4].mxu0 %v691_v34  ;;  %406 = vmatmul.mubr.bf16.gmra.mrb[4].mxu1 %v691_v34 }
  0x52   :  { %342 = vmatprep.mubr.bf16.mxu0 %v772_v0  ;;  %415 = vmatprep.mubr.bf16.mxu1 %v772_v0 }
  0x59   :  { %343 = vmatmul.mubr.bf16.gmra.mrb[8].mxu0 %v692_v35  ;;  %416 = vmatmul.mubr.bf16.gmra.mrb[8].mxu1 %v692_v35 }
  0x5a   :  { %352 = vmatprep.mubr.bf16.mxu0 %v772_v0  ;;  %425 = vmatprep.mubr.bf16.mxu1 %v772_v0 }
  0x61   :  { %353 = vmatmul.mubr.bf16.gmra.mrb[12].mxu0 %v693_v36  ;;  %426 = vmatmul.mubr.bf16.gmra.mrb[12].mxu1 %v693_v36 }
 0x11c   :  { %v324_v48 = vpop.f32.mrb[0].mxu0  ;;  %v397_v49 = vpop.f32.mrb[0].mxu1 }
 0x11d   :  { %v325_v50 = vadd.f32 %v324_v48, %v832_v44  ;;  %v398_v51 = vadd.f32 %v397_v49, %v834_v45  ;;  %v326_v52 = vpop.f32.mrb[1].mxu0  ;;  %v399_v53 = vpop.f32.mrb[1].mxu1 }
 0x11e   :  { %v327_v54 = vadd.f32 %v326_v52, %v836_v46  ;;  %v400_v55 = vadd.f32 %v399_v53, %v838_v47  ;;  %v328_v56 = vpop.f32.mrb[2].mxu0  ;;  %v401_v57 = vpop.f32.mrb[2].mxu1 }
 0x11f   :  { %v329_v58 = vadd.f32 %v328_v56, %v832_v44  ;;  %v402_v59 = vadd.f32 %v401_v57, %v834_v45  ;;  %v330_v60 = vpop.f32.mrb[3].mxu0  ;;  %v403_v61 = vpop.f32.mrb[3].mxu1 }
 0x120   :  { %v618_v62 = vpack.c.bf16 %v327_v54, %v325_v50  ;;  %v619_v63 = vpack.c.bf16 %v400_v55, %v398_v51  ;;  %v331_v0 = vadd.f32 %v330_v60, %v836_v46  ;;  %v404_v1 = vadd.f32 %v403_v61, %v838_v47 }
 0x122   :  { %532 = vst [vmem:[#allocation7] sm:$0xff] %v618_v62  ;;  %533 = vst [vmem:[#allocation7 + $0x8] sm:$0xff] %v619_v63  ;;  %v620_v2 = vpack.c.bf16 %v331_v0, %v329_v58  ;;  %v621_v3 = vpack.c.bf16 %v404_v1, %v402_v59 }
 0x124   :  { %534 = vst [vmem:[#allocation7 + $0x10] sm:$0xff] %v620_v2  ;;  %535 = vst [vmem:[#allocation7 + $0x18] sm:$0xff] %v621_v3  ;;  %v334_v4 = vpop.f32.mrb[4].mxu0  ;;  %v407_v5 = vpop.f32.mrb[4].mxu1 }
 0x125   :  { %v335_v6 = vadd.f32 %v334_v4, %v832_v44  ;;  %v408_v7 = vadd.f32 %v407_v5, %v834_v45  ;;  %v336_v8 = vpop.f32.mrb[5].mxu0  ;;  %v409_v9 = vpop.f32.mrb[5].mxu1 }
 0x126   :  { %v337_v10 = vadd.f32 %v336_v8, %v836_v46  ;;  %v410_v11 = vadd.f32 %v409_v9, %v838_v47  ;;  %v338_v12 = vpop.f32.mrb[6].mxu0  ;;  %v411_v13 = vpop.f32.mrb[6].mxu1 }
 0x127   :  { %v339_v14 = vadd.f32 %v338_v12, %v832_v44  ;;  %v412_v15 = vadd.f32 %v411_v13, %v834_v45  ;;  %v340_v16 = vpop.f32.mrb[7].mxu0  ;;  %v413_v17 = vpop.f32.mrb[7].mxu1 }
 0x128   :  { %v622_v18 = vpack.c.bf16 %v337_v10, %v335_v6  ;;  %v623_v19 = vpack.c.bf16 %v410_v11, %v408_v7  ;;  %v341_v20 = vadd.f32 %v340_v16, %v836_v46  ;;  %v414_v21 = vadd.f32 %v413_v17, %v838_v47 }
 0x12a   :  { %536 = vst [vmem:[#allocation7 + $0x20] sm:$0xff] %v622_v18  ;;  %537 = vst [vmem:[#allocation7 + $0x28] sm:$0xff] %v623_v19  ;;  %v624_v22 = vpack.c.bf16 %v341_v20, %v339_v14  ;;  %v625_v23 = vpack.c.bf16 %v414_v21, %v412_v15 }
 0x12c   :  { %538 = vst [vmem:[#allocation7 + $0x30] sm:$0xff] %v624_v22  ;;  %539 = vst [vmem:[#allocation7 + $0x38] sm:$0xff] %v625_v23  ;;  %v344_v24 = vpop.f32.mrb[8].mxu0  ;;  %v417_v25 = vpop.f32.mrb[8].mxu1 }
 0x12d   :  { %v345_v26 = vadd.f32 %v344_v24, %v832_v44  ;;  %v418_v27 = vadd.f32 %v417_v25, %v834_v45  ;;  %v346_v28 = vpop.f32.mrb[9].mxu0  ;;  %v419_v29 = vpop.f32.mrb[9].mxu1 }
 0x12e   :  { %v347_v30 = vadd.f32 %v346_v28, %v836_v46  ;;  %v420_v31 = vadd.f32 %v419_v29, %v838_v47  ;;  %v348_v32 = vpop.f32.mrb[10].mxu0  ;;  %v421_v33 = vpop.f32.mrb[10].mxu1 }
 0x12f   :  { %v349_v34 = vadd.f32 %v348_v32, %v832_v44  ;;  %v422_v35 = vadd.f32 %v421_v33, %v834_v45  ;;  %v350_v36 = vpop.f32.mrb[11].mxu0  ;;  %v423_v37 = vpop.f32.mrb[11].mxu1 }
 0x130   :  { %v626_v38 = vpack.c.bf16 %v347_v30, %v345_v26  ;;  %v627_v39 = vpack.c.bf16 %v420_v31, %v418_v27  ;;  %v351_v40 = vadd.f32 %v350_v36, %v836_v46  ;;  %v424_v41 = vadd.f32 %v423_v37, %v838_v47 }
 0x132   :  { %540 = vst [vmem:[#allocation7 + $0x40] sm:$0xff] %v626_v38  ;;  %541 = vst [vmem:[#allocation7 + $0x48] sm:$0xff] %v627_v39  ;;  %v628_v42 = vpack.c.bf16 %v351_v40, %v349_v34  ;;  %v629_v43 = vpack.c.bf16 %v424_v41, %v422_v35 }
 0x134   :  { %542 = vst [vmem:[#allocation7 + $0x50] sm:$0xff] %v628_v42  ;;  %543 = vst [vmem:[#allocation7 + $0x58] sm:$0xff] %v629_v43  ;;  %v354_v48 = vpop.f32.mrb[12].mxu0  ;;  %v427_v49 = vpop.f32.mrb[12].mxu1 }
 0x135   :  { %v355_v50 = vadd.f32 %v354_v48, %v832_v44  ;;  %v428_v51 = vadd.f32 %v427_v49, %v834_v45  ;;  %v356_v52 = vpop.f32.mrb[13].mxu0  ;;  %v429_v53 = vpop.f32.mrb[13].mxu1 }
 0x136   :  { %v357_v54 = vadd.f32 %v356_v52, %v836_v46  ;;  %v430_v55 = vadd.f32 %v429_v53, %v838_v47  ;;  %v358_v56 = vpop.f32.mrb[14].mxu0  ;;  %v431_v57 = vpop.f32.mrb[14].mxu1 }
 0x137   :  { %v359_v58 = vadd.f32 %v358_v56, %v832_v44  ;;  %v432_v59 = vadd.f32 %v431_v57, %v834_v45  ;;  %v360_v60 = vpop.f32.mrb[15].mxu0  ;;  %v433_v61 = vpop.f32.mrb[15].mxu1 }
 0x138   :  { %v630_v62 = vpack.c.bf16 %v357_v54, %v355_v50  ;;  %v631_v63 = vpack.c.bf16 %v430_v55, %v428_v51  ;;  %v361_v0 = vadd.f32 %v360_v60, %v836_v46  ;;  %v434_v1 = vadd.f32 %v433_v61, %v838_v47 }
 0x13a   :  { %544 = vst [vmem:[#allocation7 + $0x60] sm:$0xff] %v630_v62  ;;  %545 = vst [vmem:[#allocation7 + $0x68] sm:$0xff] %v631_v63  ;;  %v632_v2 = vpack.c.bf16 %v361_v0, %v359_v58  ;;  %v633_v3 = vpack.c.bf16 %v434_v1, %v432_v59 }
 0x13c   :  { %546 = vst [vmem:[#allocation7 + $0x70] sm:$0xff] %v632_v2  ;;  %547 = vst [vmem:[#allocation7 + $0x78] sm:$0xff] %v633_v3 }
 0x13d   :  { %749 = shalt.err (!%p746_p6)
}
 0x13e   :  { %s750_s17 = scalar_lea.hbm %s890_s3, 2048 }
 0x13f   :  { %p751_p7 = scmp.ne.s32.totalorder %s890_s3, %s750_s17  ;;  %p754_p8 = scmp.lt.u32.totalorder %s750_s17, %s890_s3 }
 0x141   :  { %p756_p9 = pnand %p754_p8, %p751_p7 }
 0x143   :  { %759 = shalt.err (!%p756_p9)
}
 0x144   :  { %559 = dma.vmem_to_hbm [thread:$0]  %s554_s13, 2048, %s890_s3, [#allocation4], %s770_s0, %s770_s0, %s771_s9  }
 0x145   :  { %764 = dma.done.wait [#allocation4], 2048  }
 0x146   :  { %765 = vsyncadd [#allocation4], 4294965248 }
 0x147   :  { %563 = vsyncpa [#allocation3], 1 }
 0x148   :  { %564 = vsyncpa [#allocation6], 1 }
 0x149   :  { %565 = vsyncpa [#allocation4], 1 }

</bundles_post_ra>
